<compile_context>
chip_gen: v7x
topology: tpu7x:2x2x1
jax: 0.10.0
libtpu: 0.0.40
codegen_flags: <defaults>
</compile_context>

<pallas_src>
import functools
import math

import jax
import jax.numpy as jnp
from jax.experimental import pallas as pl
from jax.experimental.pallas import tpu as pltpu


_INV_SQRT2 = 0.7071067811865476  # 1/sqrt(2): constant multiply instead of divide
_LN_EPS = 1e-12                  # TF-style: epsilon inside the square root


def _round_up(n, m):
    return ((n + m - 1) // m) * m


def _transform_kernel(x_ref, w_ref, b_ref, gamma_ref, beta_ref, o_ref, *, exact_gelu):
    # x_ref: (tm, H) rows in the caller's dtype; w_ref: (H, H) bf16;
    # b/gamma/beta: (1, H) f32.  Cast x for the MXU here (no wrapper HBM pass);
    # matmul accumulates in f32, epilogue stays in f32.
    x = x_ref[...].astype(jnp.bfloat16)
    h = jnp.dot(x, w_ref[...], preferred_element_type=jnp.float32)
    h = h + b_ref[...].astype(jnp.float32)

    if exact_gelu:
        # gelu(x) = 0.5 * x * (1 + erf(x / sqrt(2)))  (divide folded into a constant mul)
        h = 0.5 * h * (1.0 + jax.lax.erf(h * jnp.float32(_INV_SQRT2)))
    else:
        # tanh approximation (EUP slot) -- opt-in, small numeric delta vs exact erf.
        h = jax.nn.gelu(h, approximate=True)

    # BertLayerNorm, one-pass: both reductions issued from h so the XLU units overlap.
    # variance = E[h^2] - mean^2 in f32 (clamped at 0 against rounding), rsqrt on the EUP.
    inv_h = jnp.float32(1.0 / h.shape[-1])
    s1 = jnp.sum(h, axis=-1, keepdims=True)
    s2 = jnp.sum(h * h, axis=-1, keepdims=True)
    u = s1 * inv_h
    var = jnp.maximum(s2 * inv_h - u * u, 0.0)
    n = (h - u) * jax.lax.rsqrt(var + jnp.float32(_LN_EPS))
    y = gamma_ref[...].astype(jnp.float32) * n + beta_ref[...].astype(jnp.float32)

    o_ref[...] = y.astype(o_ref.dtype)


def bert_prediction_head_transform(
    hidden_states, w, b, gamma, beta, *,
    tm=1024,                            # row tile; multiple of 128 (v5e) / 256 (v6e, v7x)
    exact_gelu=True,                    # erf GELU (matches the PyTorch module exactly)
    out_dtype=None,                     # default: mirror input dtype
    vmem_limit_bytes=48 * 1024 * 1024,  # > v5e 16 MiB scoped default, < v7x 64 MiB physical
):
    """hidden_states: (B, S, H); w: (H, H) laid out (in, out); b/gamma/beta: (H,)."""
    B, S, H = hidden_states.shape
    N = B * S
    out_dtype = hidden_states.dtype if out_dtype is None else out_dtype

    # Row tile: clamp for small inputs (multiple of 8 sublanes) and make sure the grid
    # has at least 2 steps (ideally even) so v7x can shard rows across its 2 TCs.
    tm_eff = max(8, min(tm, _round_up(pl.cdiv(N, 2), 8)))
    g = pl.cdiv(N, tm_eff)
    if g > 1 and g % 2 == 1:
        tm_eff = max(8, min(tm_eff, _round_up(pl.cdiv(N, g + 1), 8)))
    grid = (pl.cdiv(N, tm_eff),)

    # Activations go in untouched (in-kernel bf16 cast).  Weight is cast to bf16 once
    # here only if needed -- production code should store it bf16 at model init.
    x2d = hidden_states.reshape(N, H)
    w_mx = w if w.dtype == jnp.bfloat16 else w.astype(jnp.bfloat16)
    b2d = b.reshape(1, H).astype(jnp.float32)
    g2d = gamma.reshape(1, H).astype(jnp.float32)
    beta2d = beta.reshape(1, H).astype(jnp.float32)

    cost = pl.CostEstimate(
        flops=2 * N * H * H,
        transcendentals=N * H,  # one erf/tanh per output element
        bytes_accessed=(x2d.size * x2d.dtype.itemsize
                        + w_mx.size * w_mx.dtype.itemsize
                        + 3 * H * 4
                        + N * H * jnp.dtype(out_dtype).itemsize),
    )

    kernel = functools.partial(_transform_kernel, exact_gelu=exact_gelu)

    out = pl.pallas_call(
        kernel,
        out_shape=jax.ShapeDtypeStruct((N, H), out_dtype),
        grid_spec=pltpu.PrefetchScalarGridSpec(
            num_scalar_prefetch=0,
            grid=grid,
            in_specs=[
                pl.BlockSpec((tm_eff, H), lambda i: (i, 0)),  # activation rows tile
                pl.BlockSpec((H, H), lambda i: (0, 0)),       # dense weight (constant)
                pl.BlockSpec((1, H), lambda i: (0, 0)),       # dense bias
                pl.BlockSpec((1, H), lambda i: (0, 0)),       # LN gamma
                pl.BlockSpec((1, H), lambda i: (0, 0)),       # LN beta
            ],
            out_specs=pl.BlockSpec((tm_eff, H), lambda i: (i, 0)),
        ),
        compiler_params=pltpu.CompilerParams(
            dimension_semantics=("parallel",),   # shard rows across v7x's 2 TCs
            vmem_limit_bytes=vmem_limit_bytes),
        cost_estimate=cost,
    )(x2d, w_mx, b2d, g2d, beta2d)

    return out.reshape(B, S, H)


def _reference(hidden_states, w, b, gamma, beta):
    """Pure-JAX reference mirroring the kernel's bf16-operand / f32-accumulate matmul,
    but with the textbook two-pass LayerNorm (like the PyTorch module)."""
    B, S, H = hidden_states.shape
    x = hidden_states.reshape(-1, H).astype(jnp.bfloat16)
    h = jnp.dot(x, w.astype(jnp.bfloat16), preferred_element_type=jnp.float32)
    h = h + b.astype(jnp.float32)
    h = 0.5 * h * (1.0 + jax.lax.erf(h * jnp.float32(_INV_SQRT2)))
    u = jnp.mean(h, axis=-1, keepdims=True)
    s = jnp.mean((h - u) ** 2, axis=-1, keepdims=True)
    h = (h - u) / jnp.sqrt(s + _LN_EPS)
    y = gamma * h + beta
    return y.reshape(B, S, H).astype(hidden_states.dtype)


if __name__ == "__main__":
    key = jax.random.PRNGKey(0)
    k_x, k_w, k_b = jax.random.split(key, 3)

    B, S, H = 2, 8, 32  # small demo shape; production BERT is H=768/1024

    hidden_states = jax.random.normal(k_x, (B, S, H), dtype=jnp.float32)

    # Deterministic synthetic params (mimics nn.Linear uniform init).
    bound = 1.0 / math.sqrt(H)
    w = jax.random.uniform(k_w, (H, H), jnp.float32, -bound, bound)  # (in, out)
    b = jax.random.uniform(k_b, (H,), jnp.float32, -bound, bound)
    gamma = jnp.ones((H,), jnp.float32)   # BertLayerNorm.gamma
    beta = jnp.zeros((H,), jnp.float32)   # BertLayerNorm.beta

    out = bert_prediction_head_transform(hidden_states, w, b, gamma, beta)
    out = jax.block_until_ready(out)

    ref = _reference(hidden_states, w, b, gamma, beta)
    assert out.shape == (B, S, H)
    assert out.dtype == hidden_states.dtype
    # bf16 MXU operands: compare against the bf16-aware reference (vs a pure-f32
    # torch reference expect ~1e-2 level agreement instead).
    assert jnp.allclose(out, ref, atol=5e-3, rtol=5e-3), float(
        jnp.max(jnp.abs(out - ref)))

    print("KERNEL_OK")
</pallas_src>

<mosaic_0001>
module attributes {stable_mosaic.version = 11 : i64} {
  func.func @_transform_kernel(%arg0: i32, %arg1: memref<8x32xf32, #tpu.memory_space<vmem>>, %arg2: memref<32x32xbf16, #tpu.memory_space<vmem>>, %arg3: memref<1x32xf32, #tpu.memory_space<vmem>>, %arg4: memref<1x32xf32, #tpu.memory_space<vmem>>, %arg5: memref<1x32xf32, #tpu.memory_space<vmem>>, %arg6: memref<8x32xf32, #tpu.memory_space<vmem>>) attributes {dimension_semantics = [#tpu.dimension_semantics<parallel>], iteration_bounds = array<i64: 2>, scalar_prefetch = 0 : i64, scratch_operands = 0 : i64, tpu.core_type = #tpu.core_type<tc>, window_params = [{transform_indices = @transform_0, window_bounds = array<i64: 8, 32>}, {pipeline_mode = #tpu.pipeline_mode<synchronous>, transform_indices = @transform_1, window_bounds = array<i64: 32, 32>}, {pipeline_mode = #tpu.pipeline_mode<synchronous>, transform_indices = @transform_2, window_bounds = array<i64: 1, 32>}, {pipeline_mode = #tpu.pipeline_mode<synchronous>, transform_indices = @transform_3, window_bounds = array<i64: 1, 32>}, {pipeline_mode = #tpu.pipeline_mode<synchronous>, transform_indices = @transform_4, window_bounds = array<i64: 1, 32>}, {transform_indices = @transform_5, window_bounds = array<i64: 8, 32>}]} {
    %c0 = arith.constant 0 : index
    %c0_0 = arith.constant 0 : index
    %0 = vector.load %arg1[%c0, %c0_0] : memref<8x32xf32, #tpu.memory_space<vmem>>, vector<8x32xf32>
    %1 = arith.truncf %0 : vector<8x32xf32> to vector<8x32xbf16>
    %c0_1 = arith.constant 0 : index
    %c0_2 = arith.constant 0 : index
    %2 = vector.load %arg2[%c0_1, %c0_2] : memref<32x32xbf16, #tpu.memory_space<vmem>>, vector<32x32xbf16>
    %cst = arith.constant dense<0.000000e+00> : vector<8x32xf32>
    %3 = tpu.matmul %1, %2, %cst {dimension_numbers = #tpu.dot_dimension_numbers<[1], [0], [0], [1], [0, 0, 1, 1], [], []>} : vector<8x32xbf16>, vector<32x32xbf16>, vector<8x32xf32> -> vector<8x32xf32>
    %c0_3 = arith.constant 0 : index
    %c0_4 = arith.constant 0 : index
    %4 = vector.load %arg3[%c0_3, %c0_4] : memref<1x32xf32, #tpu.memory_space<vmem>>, vector<1x32xf32>
    %5 = vector.broadcast %4 : vector<1x32xf32> to vector<8x32xf32>
    %6 = arith.addf %3, %5 : vector<8x32xf32>
    %cst_5 = arith.constant 5.000000e-01 : f32
    %7 = vector.broadcast %cst_5 : f32 to vector<8x32xf32>
    %8 = arith.mulf %7, %6 : vector<8x32xf32>
    %cst_6 = arith.constant 0.707106769 : f32
    %9 = vector.broadcast %cst_6 : f32 to vector<8x32xf32>
    %10 = arith.mulf %6, %9 : vector<8x32xf32>
    %11 = math.erf %10 : vector<8x32xf32>
    %cst_7 = arith.constant 1.000000e+00 : f32
    %12 = vector.broadcast %cst_7 : f32 to vector<8x32xf32>
    %13 = arith.addf %12, %11 : vector<8x32xf32>
    %14 = arith.mulf %8, %13 : vector<8x32xf32>
    %cst_8 = arith.constant dense<0.000000e+00> : vector<8xf32>
    %15 = vector.multi_reduction <add>, %14, %cst_8 [1] : vector<8x32xf32> to vector<8xf32>
    %16 = vector.shape_cast %15 : vector<8xf32> to vector<8x1xf32>
    %17 = arith.mulf %14, %14 : vector<8x32xf32>
    %cst_9 = arith.constant dense<0.000000e+00> : vector<8xf32>
    %18 = vector.multi_reduction <add>, %17, %cst_9 [1] : vector<8x32xf32> to vector<8xf32>
    %19 = vector.shape_cast %18 : vector<8xf32> to vector<8x1xf32>
    %cst_10 = arith.constant 3.125000e-02 : f32
    %20 = vector.broadcast %cst_10 : f32 to vector<8x1xf32>
    %21 = arith.mulf %16, %20 : vector<8x1xf32>
    %cst_11 = arith.constant 3.125000e-02 : f32
    %22 = vector.broadcast %cst_11 : f32 to vector<8x1xf32>
    %23 = arith.mulf %19, %22 : vector<8x1xf32>
    %24 = arith.mulf %21, %21 : vector<8x1xf32>
    %25 = arith.subf %23, %24 : vector<8x1xf32>
    %cst_12 = arith.constant 0.000000e+00 : f32
    %26 = vector.broadcast %cst_12 : f32 to vector<8x1xf32>
    %27 = arith.maximumf %25, %26 : vector<8x1xf32>
    %28 = vector.broadcast %21 : vector<8x1xf32> to vector<8x32xf32>
    %29 = arith.subf %14, %28 : vector<8x32xf32>
    %cst_13 = arith.constant 9.99999996E-13 : f32
    %30 = vector.broadcast %cst_13 : f32 to vector<8x1xf32>
    %31 = arith.addf %27, %30 : vector<8x1xf32>
    %32 = math.rsqrt %31 : vector<8x1xf32>
    %33 = vector.broadcast %32 : vector<8x1xf32> to vector<8x32xf32>
    %34 = arith.mulf %29, %33 : vector<8x32xf32>
    %c0_14 = arith.constant 0 : index
    %c0_15 = arith.constant 0 : index
    %35 = vector.load %arg4[%c0_14, %c0_15] : memref<1x32xf32, #tpu.memory_space<vmem>>, vector<1x32xf32>
    %36 = vector.broadcast %35 : vector<1x32xf32> to vector<8x32xf32>
    %37 = arith.mulf %36, %34 : vector<8x32xf32>
    %c0_16 = arith.constant 0 : index
    %c0_17 = arith.constant 0 : index
    %38 = vector.load %arg5[%c0_16, %c0_17] : memref<1x32xf32, #tpu.memory_space<vmem>>, vector<1x32xf32>
    %39 = vector.broadcast %38 : vector<1x32xf32> to vector<8x32xf32>
    %40 = arith.addf %37, %39 : vector<8x32xf32>
    %c0_18 = arith.constant 0 : index
    %c0_19 = arith.constant 0 : index
    %41 = vector.load %arg6[%c0_18, %c0_19] : memref<8x32xf32, #tpu.memory_space<vmem>>, vector<8x32xf32>
    tpu.vector_store %arg6[%c0_18, %c0_19], %40 {strides = array<i32>} : memref<8x32xf32, #tpu.memory_space<vmem>>, vector<8x32xf32>,
    return
  }
  func.func @transform_0(%arg0: i32) -> (i32, i32) {
    %c0_i32 = arith.constant 0 : i32
    %c0_i32_0 = arith.constant 0 : i32
    return %arg0, %c0_i32 : i32, i32
  }
  func.func @transform_1(%arg0: i32) -> (i32, i32) {
    %c0_i32 = arith.constant 0 : i32
    %c0_i32_0 = arith.constant 0 : i32
    %c0_i32_1 = arith.constant 0 : i32
    return %c0_i32, %c0_i32_0 : i32, i32
  }
  func.func @transform_2(%arg0: i32) -> (i32, i32) {
    %c0_i32 = arith.constant 0 : i32
    %c0_i32_0 = arith.constant 0 : i32
    %c0_i32_1 = arith.constant 0 : i32
    return %c0_i32, %c0_i32_0 : i32, i32
  }
  func.func @transform_3(%arg0: i32) -> (i32, i32) {
    %c0_i32 = arith.constant 0 : i32
    %c0_i32_0 = arith.constant 0 : i32
    %c0_i32_1 = arith.constant 0 : i32
    return %c0_i32, %c0_i32_0 : i32, i32
  }
  func.func @transform_4(%arg0: i32) -> (i32, i32) {
    %c0_i32 = arith.constant 0 : i32
    %c0_i32_0 = arith.constant 0 : i32
    %c0_i32_1 = arith.constant 0 : i32
    return %c0_i32, %c0_i32_0 : i32, i32
  }
  func.func @transform_5(%arg0: i32) -> (i32, i32) {
    %c0_i32 = arith.constant 0 : i32
    %c0_i32_0 = arith.constant 0 : i32
    return %arg0, %c0_i32 : i32, i32
  }
}

</mosaic_0001>

<bundles_post_ra>
// kernel: tpu_custom_call.1
= control target key start
LH: loop header
LB: loop body
LE: loop exit
PB: predicated region body
PF: predicated region fallthrough
CT: control target
= control target key end

     0   :  { %10 = vsyncpa [#allocation3], 0  ;;  %s935_s0 = inlined_call_operand.hbm [shape: f32[16,32], index: 0, kind: input, shape index: {}]   ;;  %s936_s1 = inlined_call_operand.hbm [shape: bf16[32,32], index: 1, kind: input, shape index: {}]   ;;  %s937_s2 = inlined_call_operand.vmem [shape: f32[1,32], index: 2, kind: input, shape index: {}]   ;;  %s938_s3 = inlined_call_operand.vmem [shape: f32[1,32], index: 3, kind: input, shape index: {}]   ;;  %s939_s4 = inlined_call_operand.vmem [shape: f32[1,32], index: 4, kind: input, shape index: {}]   ;;  %s940_s5 = inlined_call_operand.hbm [shape: f32[16,32], index: 5, kind: output, shape index: {}]  }
   0x1   :  { %12 = vsyncpa [#allocation3 + $0x1], 0 }
   0x2   :  { %13 = vsyncpa [#allocation6], 0 }
   0x3   :  { %14 = vsyncpa [#allocation4], 0 }
   0x4   :  { %16 = vsyncpa [#allocation4 + $0x1], 0  ;;  %s722_s18 = smov 0   ;;  %s724_s19 = smov 0  }
   0x5   :  { %s726_s20 = smov 0   ;;  %s728_s21 = smov 0  }
   0x6 LB: > { %s743_s22 = sadd.s32 4294967295, %s683_s21   ;;  %s457_s23 = sadd.s32 4294967294, %s683_s21   ;;  %s683_s21 = sphi %s728_s21, %s960_s21   ;;  %s679_s20 = sphi %s726_s20, %s959_s20   ;;  %s675_s19 = sphi %s724_s19, %s958_s19   ;;  %s671_s18 = sphi %s722_s18, %s957_s18  }
   0x7   : > { %p42_p0 = scmp.ne.s32.totalorder %s675_s19, %s671_s18  ;;  %p941_p1 = scmp.eq.s32.totalorder %s743_s22, 0 }
   0x8   : > { %p156_p3 = scmp.eq.s32.totalorder %s457_s23, 1  ;;  %p458_p5 = scmp.ge.s32.totalorder %s683_s21, 1 }
   0x9   : > { %p752_p4 = por %p941_p1, %p42_p0  ;;  %p163_p7 = scmp.lt.s32.totalorder %s683_s21, 3 }
   0xa   : > { %p757_p6 = por %p156_p3, %p42_p0  ;;  %s685_s27 = smov [#allocation5]  }
   0xb   : > { %s944_s24 = scalar_select %p752_p4, 1, 0 }
   0xc   : > { %s945_s25 = scalar_select %p757_p6, 1, 0 }
   0xd   : > { %p762_p8 = pnand %p458_p5, %p163_p7  ;;  %s175_s28 = sshll.u32 %s685_s27, 4  ;;  %s766_s28 = int_to_ptr.vmem [resolvable:$true] %s175_s28 }
   0xe   : > { %s778_s30 = sadd.s32 1, %s683_s21   ;;  %s29_s6 = sadd.s32 1, %s679_s20 }
   0xf   : > { %s946_s26 = scalar_select %p762_p8, 1, 0 }
  0x10   : > { %p496_p9 = pneg %p762_p8  ;;  %s26_s7 = ssub.s32 %s683_s21, %s778_s30 }
  0x11   : > { %s555_s10 = scalar_lea.hbm %s936_s1, 256 }
  0x12   : > { %p773_p11 = pnand %p496_p9, %p941_p1  ;;  %p556_p12 = scmp.ne.s32.totalorder %s936_s1, %s555_s10 }
  0x13   : > { %p562_p5 = scmp.lt.u32.totalorder %s555_s10, %s936_s1 }
  0x14   : > { %p557_p13 = pneg %p773_p11 }
  0x16   : > { %p558_p0 = pnand %p557_p13, %p556_p12 }
  0x18   : > { %p559_p3 = pneg %p558_p0 }
  0x1a   : > { %p564_p7 = pnand %p562_p5, %p559_p3 }
  0x1c   : > { %567 = shalt.err (!%p564_p7)
}
  0x1d   : > { %s568_s15 = scalar_lea.vmem %s766_s28, 256  ;;  %p576_p2 = scmp.lt.s32.totalorder %s766_s28, %s766_s28 }
  0x1e   : > { %p569_p9 = scmp.ne.s32.totalorder %s766_s28, %s568_s15  ;;  %p577_p6 = scmp.lt.s32.totalorder %s568_s15, %s568_s15 }
  0x20   : > { %p571_p10 = pnand %p569_p9, %p557_p13  ;;  %p578_p4 = por %p577_p6, %p576_p2 }
  0x22   : > { %p572_p1 = pneg %p571_p10 }
  0x24   : > { %p579_p8 = pnand %p578_p4, %p572_p1 }
  0x26   : > { %582 = shalt.err (!%p579_p8)
}
  0x27   : > { %s686_s16 = smov 64   ;;  %s687_s17 = smov 4  }
  0x28   : > { %499 = dma.hbm_to_vmem [thread:$0]  (!%p773_p11), %s936_s1, 256, %s766_s28, [#allocation6], %s686_s16, %s686_s16, %s687_s17  }
  0x29   : > { %p27_p2 = scmp.eq.s32.totalorder %s26_s7, 0  ;;  %p36_p1 = scmp.ne.s32.totalorder %s679_s20, %s675_s19 }
  0x2a   : > { %p37_p4 = scmp.eq.s32.totalorder %s683_s21, 0  ;;  %p509_p6 = scmp.lt.s32.totalorder %s683_s21, 2 }
  0x2b   : > { %s809_s8 = scalar_select %p27_p2, %s679_s20, %s29_s6  }
  0x2c   : > { %p38_p8 = por %p37_p4, %p36_p1  ;;  %p948_p10 = scmp.eq.s32.totalorder %s743_s22, 1 }
  0x2d   : > { %s198_s10 = sand.u32 1, %s679_s20   ;;  %s462_s11 = sshll.u32 %s683_s21, 7 }
  0x2e   : > { %p813_p12 = por %p948_p10, %p36_p1  ;;  %s461_s12 = sshll.u32 %s198_s10, 3 }
  0x2f   : > { %s822_s14 = scalar_lea.hbm %s935_s0, %s462_s11  ;;  %s202_s28 = scalar_lea.vmem [#allocation2], %s461_s12 }
  0x30   : > { %s209_s6 = sshll.u32 %s202_s28, 4  ;;  %p824_p11 = pnand %p509_p6, %p38_p8  ;;  %s828_s6 = int_to_ptr.vmem [resolvable:$true] %s209_s6 }
  0x31   : > { %s199_s15 = scalar_lea.sflag [#allocation3], %s198_s10  ;;  %s583_s16 = scalar_lea.hbm %s822_s14, 128 }
  0x32   : > { %p584_p13 = scmp.ne.s32.totalorder %s822_s14, %s583_s16  ;;  %p585_p0 = pneg %p824_p11 }
  0x33   : > { %s588_s27 = scalar_lea.hbm %s935_s0, 256  ;;  %p589_p7 = scmp.lt.u32.totalorder %s822_s14, %s935_s0 }
  0x34   : > { %p586_p3 = pnand %p585_p0, %p584_p13  ;;  %p590_p9 = scmp.lt.u32.totalorder %s588_s27, %s583_s16 }
  0x35   : > { %p592_p1 = scmp.lt.u32.totalorder %s583_s16, %s822_s14 }
  0x36   : > { %p587_p5 = pneg %p586_p3  ;;  %p591_p2 = por %p590_p9, %p589_p7 }
  0x38   : > { %p593_p4 = por %p592_p1, %p591_p2 }
  0x3a   : > { %p594_p6 = pnand %p593_p4, %p587_p5 }
  0x3c   : > { %597 = shalt.err (!%p594_p6)
}
  0x3d   : > { %s598_s10 = scalar_lea.vmem %s828_s6, 128  ;;  %s688_s29 = smov [#allocation2]  }
  0x3e   : > { %p599_p8 = scmp.ne.s32.totalorder %s828_s6, %s598_s10  ;;  %s603_s13 = sshll.u32 %s688_s29, 4  ;;  %s604_s13 = int_to_ptr.vmem [resolvable:$false] %s603_s13 }
  0x3f   : > { %s605_s28 = scalar_lea.vmem %s604_s13, 256  ;;  %p606_p3 = scmp.lt.s32.totalorder %s828_s6, %s604_s13 }
  0x40   : > { %p601_p10 = pnand %p599_p8, %p585_p0  ;;  %p607_p7 = scmp.lt.s32.totalorder %s605_s28, %s598_s10 }
  0x42   : > { %p602_p13 = pneg %p601_p10  ;;  %p608_p9 = por %p607_p7, %p606_p3 }
  0x44   : > { %p609_p2 = pnand %p608_p9, %p602_p13 }
  0x46   : > { %612 = shalt.err (!%p609_p2)
}
  0x47   : > { %503 = dma.hbm_to_vmem [thread:$0]  (!%p824_p11), %s822_s14, 128, %s828_s6, %s199_s15  }
  0x48   : > { %p951_p5 = scmp.ne.s32.totalorder %s946_s26, 0 }
  0x49   : > { %s858_s16 = sand.u32 (!%p951_p5), 1, %s675_s19   ;;  %p952_p0 = scmp.ne.s32.totalorder (!%p951_p5), %s944_s24, 0 }
  0x4a   : > { %218 = sbr.rel (%p951_p5) target bundleno = 511 (0x1ff), region = 40  ;;  %s464_s17 = sshll.u32 (!%p951_p5), %s858_s16, 3 }
  0x4b   : > { %s221_s23 = scalar_lea.sflag (!%p951_p5), [#allocation3], %s858_s16  ;;  %s224_s27 = scalar_lea.vmem (!%p951_p5), [#allocation2], %s464_s17 }
  0x51   : > { %658 = dma.done.wait (%p952_p0), %s221_s23, 128  }
  0x52   : > { %660 = vsyncadd (%p952_p0), %s221_s23, 4294967168  ;;  %p953_p11 = scmp.eq.s32.totalorder %s743_s22, 0 }
  0x54   : > { %662 = dma.done.wait (%p953_p11), [#allocation6], 256   ;;  %p954_p1 = pmov %p953_p11 }
  0x55   : > { %v689_v0 = vmov 0.0   ;;  %vm690_vm0 = vmmov 0   ;;  %v549_v1 = vld [vmem:[#allocation5] sm:$0xff]   ;;  %v550_v2 = vld [vmem:[#allocation5 + $0x8] sm:$0xff]   ;;  %v256_v3 = vld [vmem:[%s224_s27] sm:$0xff]  ;;  %vm281_vm1 = vcmask 261120  }
  0x56   : > { %664 = vsyncadd (%p954_p1), [#allocation6], 4294967040  ;;  %480 = vmatprep.subr.bf16.mxu0 %v689_v0  ;;  %484 = vmatprep.mubr.msk.bf16.mxu0 %vm690_vm0, %v689_v0  ;;  %v257_v4 = vpack.c.bf16 %v256_v3, %v256_v3  ;;  %v467_v5 = vld [vmem:[%s937_s2] ss:$0 sm:$0xff]  ;;  %s474_s11 = sshll.u32 %s743_s22, 7  ;;  %s254_s12 = scalar_lea.vmem [#allocation7], %s464_s17 }
  0x57   : > { %481 = vmatpush3.bf16.msra.mxu0 %v549_v1  ;;  %v471_v29 = vld [vmem:[%s938_s3] ss:$0 sm:$0xff]  ;;  %s377_s10 = sshll.u32 %s254_s12, 4  ;;  %s890_s28 = scalar_lea.hbm %s940_s5, %s474_s11  ;;  %s892_s10 = int_to_ptr.vmem [resolvable:$true] %s377_s10 }
  0x58   : > { %482 = vmatprep.subr.bf16.mxu0 %v689_v0  ;;  %v472_v31 = vld [vmem:[%s939_s4] ss:$0 sm:$0xff]  ;;  %s364_s23 = scalar_lea.sflag [#allocation4], %s858_s16  ;;  %s613_s27 = scalar_lea.vmem %s892_s10, 128 }
  0x59   : > { %p614_p4 = scmp.ne.s32.totalorder %s892_s10, %s613_s27  ;;  %s691_s22 = smov [#allocation7]  }
  0x5a   : > { %s617_s17 = sshll.u32 %s691_s22, 4  ;;  %s618_s17 = int_to_ptr.vmem [resolvable:$false] %s617_s17 }
  0x5b   : > { %483 = vmatpush3.bf16.msra.mxu0 %v550_v2  ;;  %p615_p6 = pnand %p614_p4, %p813_p12  ;;  %s619_s24 = scalar_lea.vmem %s618_s17, 256 }
  0x5c   : > { %p620_p10 = scmp.lt.s32.totalorder %s892_s10, %s618_s17  ;;  %p621_p13 = scmp.lt.s32.totalorder %s619_s24, %s613_s27 }
  0x5d   : > { %p616_p8 = pneg %p615_p6 }
  0x5e   : > { %485 = vmatmul.mubr.msk.bf16.vlgmr.msra.gmra.mrb[0].mxu0 %vm281_vm1, %v257_v4  ;;  %p622_p3 = por %p621_p13, %p620_p10 }
  0x60   : > { %p623_p7 = pnand %p622_p3, %p616_p8 }
 0x131   : > { %v319_v6 = vpop.f32.mrb[0].mxu0 }
 0x132   : > { %v320_v7 = vadd.f32 %v467_v5, %v319_v6  ;;  %v486_v8 = vpop.f32.mrb[1].mxu0 }
 0x133   : > { %v322_v9 = vpop.f32.mrb[2].mxu0 }
 0x134   : > { %v326_v10 = vmul.f32 0.70710677, %v320_v7  ;;  %v487_v11 = vpop.f32.mrb[3].mxu0  ;;  %v325_v13 = vmul.f32 0.5, %v320_v7 }
 0x136   : > { %551 = verf.f32 %v326_v10 }
 0x140   : > { %v552_v12 = vpop.eup %551 }
 0x141   : > { %v328_v14 = vadd.f32 1.0, %v552_v12 }
 0x143   : > { %v329_v15 = vmul.f32 %v328_v14, %v325_v13 }
 0x145   : > { %v330_v16 = vsel %vm281_vm1, %v329_v15, 0.0  ;;  %v333_v17 = vmul.f32 %v329_v15, %v329_v15 }
 0x146   : > { %331 = vadd.xlane.f32.xlu0 %v330_v16 }
 0x147   : > { %v334_v18 = vsel %vm281_vm1, %v333_v17, 0.0 }
 0x14a   : > { %335 = vadd.xlane.f32.xlu0 %v334_v18 }
 0x1d3   : > { %v332_v19 = vpop.xlane.xlu0 %331 }
 0x1d4   : > { %v337_v20 = vmul.f32 0.03125, %v332_v19 }
 0x1d6   : > { %v339_v22 = vmul.f32 %v337_v20, %v337_v20  ;;  %v342_v27 = vsub.f32 %v329_v15, %v337_v20 }
 0x1d7   : > { %v336_v21 = vpop.xlane.xlu0 %335 }
 0x1d8   : > { %v338_v23 = vmul.f32 0.03125, %v336_v21 }
 0x1da   : > { %v340_v24 = vsub.f32 %v338_v23, %v339_v22 }
 0x1dc   : > { %v341_v25 = vmax.f32 %v340_v24, 0.0 }
 0x1de   : > { %v343_v26 = vadd.f32 1e-12, %v341_v25 }
 0x1e0   : > { %553 = vrsqrt.f32 %v343_v26 }
 0x1ea   : > { %v554_v28 = vpop.eup %553 }
 0x1eb   : > { %v345_v30 = vmul.f32 %v554_v28, %v342_v27 }
 0x1ed   : > { %v353_v32 = vmul.f32 %v471_v29, %v345_v30 }
 0x1ef   : > { %v361_v33 = vadd.f32 %v472_v31, %v353_v32 }
 0x1f1   : > { %362 = vst.msk [vmem:[%s254_s12] sm:$0xff] %vm281_vm1, %v361_v33 }
 0x1f2   : > { %626 = shalt.err (!%p623_p7)
}
 0x1f3   : > { %s627_s16 = scalar_lea.hbm %s890_s28, 128  ;;  %s631_s6 = scalar_lea.hbm %s940_s5, 256 }
 0x1f4   : > { %p628_p9 = scmp.ne.s32.totalorder %s890_s28, %s627_s16  ;;  %p632_p0 = scmp.lt.u32.totalorder %s890_s28, %s940_s5 }
 0x1f5   : > { %p633_p11 = scmp.lt.u32.totalorder %s631_s6, %s627_s16  ;;  %p635_p4 = scmp.lt.u32.totalorder %s627_s16, %s890_s28 }
 0x1f6   : > { %p629_p2 = pnand %p628_p9, %p813_p12 }
 0x1f7   : > { %p634_p1 = por %p633_p11, %p632_p0 }
 0x1f8   : > { %p630_p5 = pneg %p629_p2 }
 0x1f9   : > { %p636_p6 = por %p635_p4, %p634_p1 }
 0x1fb   : > { %p637_p8 = pnand %p636_p6, %p630_p5 }
 0x1fd   : > { %640 = shalt.err (!%p637_p8)
}
 0x1fe   : > { %494 = dma.vmem_to_hbm [thread:$0]  (%p813_p12), %s892_s10, 128, %s890_s28, %s364_s23  }
 0x1ff PF: > { %s389_s11 = sand.u32 1, %s671_s18   ;;  %p955_p10 = scmp.ne.s32.totalorder %s945_s25, 0 }
 0x200   : > { %p956_p13 = scmp.ge.s32.totalorder %s683_s21, 2  ;;  %s390_s12 = scalar_lea.sflag [#allocation4], %s389_s11 }
 0x202   : > { %p505_p3 = pnand %p956_p13, %p955_p10 }
 0x204   : > { %666 = dma.done.wait (!%p505_p3), %s390_s12, 128  }
 0x205   : > { %668 = vsyncadd (!%p505_p3), %s390_s12, 4294967168  ;;  %p19_p7 = scmp.ge.s32.totalorder %s778_s30, 4   ;;  %s957_s18 = smov %s675_s19 }
 0x206   : > { %s958_s19 = smov %s679_s20  ;;  %s959_s20 = smov %s809_s8 }
 0x207   : > { %s960_s21 = smov %s778_s30  ;;  %21 = sbr.rel (!%p19_p7) target bundleno = 6 (0x6), region = 89 }
 0x20e   :  { %395 = vsyncpa [#allocation3], 1 }
 0x20f   :  { %397 = vsyncpa [#allocation3 + $0x1], 1 }
 0x210   :  { %398 = vsyncpa [#allocation6], 1 }
 0x211   :  { %399 = vsyncpa [#allocation4], 1 }
 0x212   :  { %401 = vsyncpa [#allocation4 + $0x1], 1 }

</bundles_post_ra>
